<compile_context>
chip_gen: v5e
topology: v5e:2x2
jax: 0.10.0
libtpu: 0.0.40
codegen_flags: <defaults>
</compile_context>

<pallas_src>
import functools
import math

import jax
import jax.numpy as jnp
from jax.experimental import pallas as pl
from jax.experimental.pallas import tpu as pltpu


def _cohere_ln_kernel(x_ref, w_ref, o_ref, *, eps, inv_d, rep, a_rows):
    # x_ref / o_ref: (tm, D) tiles; w_ref: (a_rows, D) f32, a_rows = lcm(H, 16).
    # Pass 1: fused single-pass row statistics in f32 (E[x], E[x^2]).
    x32 = x_ref[...].astype(jnp.float32)
    s1 = jnp.sum(x32, axis=-1, keepdims=True)
    s2 = jnp.sum(x32 * x32, axis=-1, keepdims=True)
    mean = s1 * inv_d
    var = jnp.maximum(s2 * inv_d - mean * mean, 0.0)
    rstd = jax.lax.rsqrt(var + eps)

    # Pass 2: re-read the narrow-dtype tile, normalize, scale by weight, downcast.
    y = (x_ref[...].astype(jnp.float32) - mean) * rstd
    tm, d = y.shape
    # (tm, D) -> (tm//a_rows, a_rows, D) is layout-free (a_rows multiple of 16);
    # broadcasting w over the leading dim reuses the same weight vregs per group.
    y3 = y.reshape(rep, a_rows, d)
    o3 = y3 * w_ref[...][None, :, :]
    o_ref[...] = o3.reshape(tm, d).astype(o_ref.dtype)


def _round_up(x, m):
    return ((x + m - 1) // m) * m


def cohere_layer_norm(hidden_states, weight, eps, *, tm_rows=None):
    """hidden_states: (tokens, H*D); weight: (H, D). Returns (tokens*H, D)."""
    H, D = weight.shape
    tokens = hidden_states.shape[0]
    assert hidden_states.shape[-1] == H * D
    N = tokens * H

    # Flatten: each row is one (token, head) normalization group. Free reshape.
    x = hidden_states.reshape(N, D)

    # Tiny periodic weight slab: lcm(H, 16) rows so the in-kernel 3D reshape is
    # layout-free for both f32 (sublane 8) and bf16 (sublane pack 16).
    A = math.lcm(H, 16)
    w_small = jnp.tile(weight.astype(jnp.float32), (A // H, 1))  # (A, D), a few KiB

    # Chip-aware row tile: bigger on 128 MiB-VMEM chips (v5e/v6e), capped on v7x.
    try:
        vmem_cap = getattr(pltpu.get_tpu_info(), "vmem_capacity_bytes", 64 * 2**20)
    except Exception:  # pragma: no cover - conservative fallback
        vmem_cap = 64 * 2**20
    big_vmem = vmem_cap >= 96 * 2**20

    itemsize = jnp.dtype(hidden_states.dtype).itemsize
    if tm_rows is None:
        tile_bytes = (2 if big_vmem else 1) * 2**20  # ~2 MiB (v5e/v6e) / ~1 MiB (v7x) DMAs
        tm_rows = max(A, tile_bytes // max(1, D * itemsize))

    n_blocks = max(1, pl.cdiv(N, tm_rows))
    if n_blocks == 1 and N >= 2 * A:
        n_blocks = 2            # give both v7x TensorCores work
    elif n_blocks > 1 and n_blocks % 2 == 1:
        n_blocks += 1           # even split across the 2 TensorCores
    tm = _round_up(pl.cdiv(N, n_blocks), A)
    grid_len = pl.cdiv(N, tm)   # last block may be partial -> masked writeback

    cost = pl.CostEstimate(
        flops=7 * N * D,
        transcendentals=N,
        bytes_accessed=2 * N * D * itemsize + A * D * 4,
    )

    out = pl.pallas_call(
        functools.partial(
            _cohere_ln_kernel,
            eps=float(eps),
            inv_d=1.0 / D,
            rep=tm // A,
            a_rows=A,
        ),
        out_shape=jax.ShapeDtypeStruct((N, D), hidden_states.dtype),
        grid_spec=pltpu.PrefetchScalarGridSpec(
            num_scalar_prefetch=0,
            grid=(grid_len,),
            in_specs=[
                pl.BlockSpec((tm, D), lambda i: (i, 0)),
                pl.BlockSpec((A, D), lambda i: (0, 0)),  # constant -> DMA'd once
            ],
            out_specs=pl.BlockSpec((tm, D), lambda i: (i, 0)),
        ),
        compiler_params=pltpu.CompilerParams(
            dimension_semantics=("parallel",),
            vmem_limit_bytes=(64 if big_vmem else 48) * 2**20,
        ),
        cost_estimate=cost,
    )(x, w_small)

    return out


def _reference(hidden_states, weight, eps):
    H, D = weight.shape
    x = hidden_states.reshape(-1, H, D).astype(jnp.float32)
    mean = jnp.mean(x, axis=-1, keepdims=True)
    xc = x - mean
    var = jnp.mean(xc * xc, axis=-1, keepdims=True)
    y = xc * jax.lax.rsqrt(var + eps)
    y = weight.astype(jnp.float32)[None] * y
    return y.reshape(-1, D).astype(hidden_states.dtype)


if __name__ == "__main__":
    key = jax.random.PRNGKey(0)
    k_x, k_w = jax.random.split(key)

    H, D = 4, 128
    eps = 1e-5
    # deterministic "checkpoint" weight (module stores nn.Parameter of shape (H, D))
    weight = (1.0 + 0.02 * jax.random.normal(k_w, (H, D), dtype=jnp.float32)).astype(
        jnp.bfloat16
    )

    # tokens=8 -> tile-divisible rows; tokens=9 -> ragged last block (masked writeback)
    for tokens in (8, 9):
        kx = jax.random.fold_in(k_x, tokens)
        x = jax.random.normal(kx, (tokens, H * D), dtype=jnp.float32).astype(jnp.bfloat16)

        out = jax.block_until_ready(cohere_layer_norm(x, weight, eps))
        ref = _reference(x, weight, eps)

        assert out.shape == (tokens * H, D)
        assert out.dtype == x.dtype
        err = float(
            jnp.max(jnp.abs(out.astype(jnp.float32) - ref.astype(jnp.float32)))
        )
        assert err < 5e-2, f"tokens={tokens}: max abs err {err}"

    # TODO(synk): the CUDA-only dropout_add_ln_fwd fast path has no Pallas
    # equivalent; only the generic (non-CUDA / >8192) branch is implemented.
    print("KERNEL_OK")
</pallas_src>

<mosaic_0001>
module attributes {stable_mosaic.version = 11 : i64} {
  func.func @_cohere_ln_kernel(%arg0: i32, %arg1: memref<16x128xbf16, #tpu.memory_space<vmem>>, %arg2: memref<16x128xf32, #tpu.memory_space<vmem>>, %arg3: memref<16x128xbf16, #tpu.memory_space<vmem>>) attributes {dimension_semantics = [#tpu.dimension_semantics<parallel>], iteration_bounds = array<i64: 2>, scalar_prefetch = 0 : i64, scratch_operands = 0 : i64, tpu.core_type = #tpu.core_type<tc>, window_params = [{transform_indices = @transform_0, window_bounds = array<i64: 16, 128>}, {pipeline_mode = #tpu.pipeline_mode<synchronous>, transform_indices = @transform_1, window_bounds = array<i64: 16, 128>}, {transform_indices = @transform_2, window_bounds = array<i64: 16, 128>}]} {
    %c0 = arith.constant 0 : index
    %c0_0 = arith.constant 0 : index
    %0 = vector.load %arg1[%c0, %c0_0] : memref<16x128xbf16, #tpu.memory_space<vmem>>, vector<16x128xbf16>
    %1 = arith.extf %0 : vector<16x128xbf16> to vector<16x128xf32>
    %cst = arith.constant dense<0.000000e+00> : vector<16xf32>
    %2 = vector.multi_reduction <add>, %1, %cst [1] : vector<16x128xf32> to vector<16xf32>
    %3 = vector.shape_cast %2 : vector<16xf32> to vector<16x1xf32>
    %4 = arith.mulf %1, %1 : vector<16x128xf32>
    %cst_1 = arith.constant dense<0.000000e+00> : vector<16xf32>
    %5 = vector.multi_reduction <add>, %4, %cst_1 [1] : vector<16x128xf32> to vector<16xf32>
    %6 = vector.shape_cast %5 : vector<16xf32> to vector<16x1xf32>
    %cst_2 = arith.constant 7.812500e-03 : f32
    %7 = vector.broadcast %cst_2 : f32 to vector<16x1xf32>
    %8 = arith.mulf %3, %7 : vector<16x1xf32>
    %cst_3 = arith.constant 7.812500e-03 : f32
    %9 = vector.broadcast %cst_3 : f32 to vector<16x1xf32>
    %10 = arith.mulf %6, %9 : vector<16x1xf32>
    %11 = arith.mulf %8, %8 : vector<16x1xf32>
    %12 = arith.subf %10, %11 : vector<16x1xf32>
    %cst_4 = arith.constant 0.000000e+00 : f32
    %13 = vector.broadcast %cst_4 : f32 to vector<16x1xf32>
    %14 = arith.maximumf %12, %13 : vector<16x1xf32>
    %cst_5 = arith.constant 9.99999974E-6 : f32
    %15 = vector.broadcast %cst_5 : f32 to vector<16x1xf32>
    %16 = arith.addf %14, %15 : vector<16x1xf32>
    %17 = math.rsqrt %16 : vector<16x1xf32>
    %c0_6 = arith.constant 0 : index
    %c0_7 = arith.constant 0 : index
    %18 = vector.load %arg1[%c0_6, %c0_7] : memref<16x128xbf16, #tpu.memory_space<vmem>>, vector<16x128xbf16>
    %19 = arith.extf %18 : vector<16x128xbf16> to vector<16x128xf32>
    %20 = vector.broadcast %8 : vector<16x1xf32> to vector<16x128xf32>
    %21 = arith.subf %19, %20 : vector<16x128xf32>
    %22 = vector.broadcast %17 : vector<16x1xf32> to vector<16x128xf32>
    %23 = arith.mulf %21, %22 : vector<16x128xf32>
    %24 = vector.shape_cast %23 : vector<16x128xf32> to vector<1x16x128xf32>
    %c0_8 = arith.constant 0 : index
    %c0_9 = arith.constant 0 : index
    %25 = vector.load %arg2[%c0_8, %c0_9] : memref<16x128xf32, #tpu.memory_space<vmem>>, vector<16x128xf32>
    %26 = vector.shape_cast %25 : vector<16x128xf32> to vector<1x16x128xf32>
    %27 = arith.mulf %24, %26 : vector<1x16x128xf32>
    %28 = vector.shape_cast %27 : vector<1x16x128xf32> to vector<16x128xf32>
    %29 = arith.truncf %28 : vector<16x128xf32> to vector<16x128xbf16>
    %c0_10 = arith.constant 0 : index
    %c0_11 = arith.constant 0 : index
    %30 = vector.load %arg3[%c0_10, %c0_11] : memref<16x128xbf16, #tpu.memory_space<vmem>>, vector<16x128xbf16>
    tpu.vector_store %arg3[%c0_10, %c0_11], %29 {strides = array<i32>} : memref<16x128xbf16, #tpu.memory_space<vmem>>, vector<16x128xbf16>,
    return
  }
  func.func @transform_0(%arg0: i32) -> (i32, i32) {
    %c0_i32 = arith.constant 0 : i32
    %c0_i32_0 = arith.constant 0 : i32
    return %arg0, %c0_i32 : i32, i32
  }
  func.func @transform_1(%arg0: i32) -> (i32, i32) {
    %c0_i32 = arith.constant 0 : i32
    %c0_i32_0 = arith.constant 0 : i32
    %c0_i32_1 = arith.constant 0 : i32
    return %c0_i32, %c0_i32_0 : i32, i32
  }
  func.func @transform_2(%arg0: i32) -> (i32, i32) {
    %c0_i32 = arith.constant 0 : i32
    %c0_i32_0 = arith.constant 0 : i32
    return %arg0, %c0_i32 : i32, i32
  }
}

</mosaic_0001>

<bundles_post_ra>
// kernel: tpu_custom_call.1
= control target key start
LH: loop header
LB: loop body
LE: loop exit
PB: predicated region body
PF: predicated region fallthrough
CT: control target
= control target key end

     0   :  { %7 = vsyncpa [#allocation3], 0  ;;  %s732_s0 = inlined_call_operand.hbm [shape: bf16[32,128], index: 0, kind: input, shape index: {}]   ;;  %s733_s1 = inlined_call_operand.hbm [shape: f32[16,128], index: 1, kind: input, shape index: {}]   ;;  %s734_s2 = inlined_call_operand.hbm [shape: bf16[32,128], index: 2, kind: output, shape index: {}]  }
   0x1   :  { %9 = vsyncpa [#allocation3 + $0x1], 0 }
   0x2   :  { %10 = vsyncpa [#allocation6], 0 }
   0x3   :  { %11 = vsyncpa [#allocation4], 0 }
   0x4   :  { %13 = vsyncpa [#allocation4 + $0x1], 0  ;;  %s588_s9 = smov 0   ;;  %s590_s10 = smov 0  }
   0x5   :  { %s592_s11 = smov 0   ;;  %s594_s12 = smov 0  }
   0x6 LB: > { %s609_s13 = sadd.s32 4294967295, %s564_s12   ;;  %s340_s14 = sadd.s32 4294967294, %s564_s12   ;;  %s564_s12 = sphi %s594_s12, %s744_s12   ;;  %s560_s11 = sphi %s592_s11, %s743_s11   ;;  %s556_s10 = sphi %s590_s10, %s742_s10   ;;  %s552_s9 = sphi %s588_s9, %s741_s9  }
   0x7   : > { %p39_p0 = scmp.ne.s32.totalorder %s556_s10, %s552_s9  ;;  %p40_p1 = scmp.eq.s32.totalorder %s609_s13, 0 }
   0x8   : > { %p84_p2 = scmp.eq.s32.totalorder %s609_s13, 1  ;;  %p90_p3 = scmp.eq.s32.totalorder %s340_s14, 1 }
   0x9   : > { %p618_p4 = por %p40_p1, %p39_p0  ;;  %p341_p5 = scmp.ge.s32.totalorder %s564_s12, 1 }
   0xa   : > { %p623_p6 = por %p90_p3, %p39_p0  ;;  %p97_p7 = scmp.lt.s32.totalorder %s564_s12, 3 }
   0xb   : > { %s108_s19 = sshll.u32 %s733_s1, 4  ;;  %s566_s21 = smov [#allocation5]   ;;  %s109_s19 = int_to_ptr.hbm [resolvable:$true] %s108_s19 }
   0xc   : > { %p631_p8 = pnand %p341_p5, %p97_p7  ;;  %s110_s22 = sshll.u32 %s566_s21, 4  ;;  %s111_s22 = int_to_ptr.vmem [resolvable:$true] %s110_s22 }
   0xd   : > { %s641_s23 = sadd.s32 1, %s564_s12   ;;  %s567_s24 = smov 128  }
   0xe   : > { %p375_p9 = pneg %p631_p8  ;;  %s568_s25 = smov 8  }
   0xf   : > { %s23_s26 = ssub.s32 %s564_s12, %s641_s23  ;;  %s26_s27 = sadd.s32 1, %s560_s11 }
  0x10   : > { %p376_p10 = pnand %p375_p9, %p40_p1  ;;  %p24_p12 = scmp.eq.s32.totalorder %s23_s26, 0 }
  0x11   : > { %p33_p13 = scmp.ne.s32.totalorder %s560_s11, %s556_s10  ;;  %p34_p0 = scmp.eq.s32.totalorder %s564_s12, 0 }
  0x12   : > { %378 = dma.hbm_to_vmem [thread:$0]  (!%p376_p10), %s109_s19, 256, %s111_s22, [#allocation6], %s567_s24, %s567_s24, %s568_s25  }
  0x13   : > { %p388_p3 = scmp.lt.s32.totalorder %s564_s12, 2  ;;  %p35_p5 = por %p34_p0, %p33_p13 }
  0x14   : > { %s651_s28 = scalar_select %p24_p12, %s560_s11, %s26_s27  }
  0x15   : > { %p655_p7 = por %p84_p2, %p33_p13  ;;  %s124_s30 = sand.u32 1, %s560_s11  }
  0x16   : > { %s356_s3 = sshll.u32 %s564_s12, 3  ;;  %s344_s4 = sshll.u32 %s124_s30, 3 }
  0x17   : > { %s133_s7 = scalar_lea.hbm %s732_s0, %s356_s3  ;;  %s128_s14 = scalar_lea.vmem [#allocation2], %s344_s4 }
  0x18   : > { %s134_s8 = sshll.u32 %s133_s7, 4  ;;  %s136_s17 = sshll.u32 %s128_s14, 4  ;;  %s135_s8 = int_to_ptr.hbm [resolvable:$true] %s134_s8  ;;  %s137_s17 = int_to_ptr.vmem [resolvable:$true] %s136_s17 }
  0x19   : > { %p666_p9 = pnand %p388_p3, %p35_p5  ;;  %s125_s19 = scalar_lea.sflag [#allocation3], %s124_s30 }
  0x1a   : > { %s464_s21 = sshra.s32 %s135_s8, 4  ;;  %s471_s26 = scalar_lea.hbm %s732_s0, 16  ;;  %s465_s21 = int_to_ptr.hbm [resolvable:$true] %s464_s21 }
  0x1b   : > { %s466_s22 = scalar_lea.hbm %s465_s21, 8  ;;  %p468_p10 = pneg %p666_p9 }
  0x1c   : > { %p467_p2 = scmp.ne.s32.totalorder %s465_s21, %s466_s22  ;;  %p472_p0 = scmp.lt.s32.totalorder %s465_s21, %s732_s0 }
  0x1d   : > { %p473_p3 = scmp.lt.s32.totalorder %s471_s26, %s466_s22 }
  0x1e   : > { %p469_p12 = pnand %p468_p10, %p467_p2 }
  0x1f   : > { %p474_p5 = por %p473_p3, %p472_p0 }
  0x20   : > { %p470_p13 = pneg %p469_p12 }
  0x22   : > { %p475_p11 = pnand %p474_p5, %p470_p13 }
  0x24   : > { %478 = shalt.err (!%p475_p11)
}
  0x25   : > { %s569_s30 = smov 64   ;;  %s570_s4 = smov 4  }
  0x26   : > { %382 = dma.hbm_to_vmem [thread:$0]  (!%p666_p9), %s135_s8, 128, %s137_s17, %s125_s19, %s569_s30, %s569_s30, %s570_s4  }
  0x27   : > { %148 = sbr.rel (%p631_p8) target bundleno = 212 (0xd4), region = 28  ;;  %s683_s5 = sand.u32 (!%p631_p8), 1, %s556_s10  }
  0x28   : > { %s348_s6 = sshll.u32 (!%p631_p8), %s683_s5, 3  ;;  %s151_s7 = scalar_lea.sflag (!%p631_p8), [#allocation3], %s683_s5 }
  0x29   : > { %s154_s14 = scalar_lea.vmem (!%p631_p8), [#allocation2], %s348_s6 }
  0x2c   : > { %539 = dma.done.wait (%p618_p4), %s151_s7, 128  }
  0x2d   : > { %541 = vsyncadd (%p618_p4), %s151_s7, 4294967168 }
  0x2e   : > { %543 = dma.done.wait (%p40_p1), [#allocation6], 256  }
  0x2f   : > { %545 = vsyncadd (%p40_p1), [#allocation6], 4294967040  ;;  %v359_v0 = vld [vmem:[%s154_s14] sm:$0xff]   ;;  %s357_s15 = sshll.u32 %s609_s13, 3  ;;  %v233_v37 = vld [vmem:[#allocation5] sm:$0xff]  ;;  %s180_s13 = scalar_lea.vmem [#allocation7], %s348_s6 }
  0x30   : > { %v360_v1 = vunpack.c.l.bf16 %v359_v0  ;;  %v361_v3 = vunpack.c.h.bf16 %v359_v0  ;;  %s253_s17 = scalar_lea.hbm %s734_s2, %s357_s15  ;;  %v234_v38 = vld [vmem:[#allocation5 + $0x8] sm:$0xff]  ;;  %s254_s18 = sshll.u32 %s180_s13, 4  ;;  %s255_s18 = int_to_ptr.vmem [resolvable:$true] %s254_s18 }
  0x31   : > { %s256_s19 = sshll.u32 %s253_s17, 4  ;;  %s242_s21 = scalar_lea.sflag [#allocation4], %s683_s5  ;;  %s257_s19 = int_to_ptr.hbm [resolvable:$true] %s256_s19 }
  0x32   : > { %187 = vadd.xlane.f32.xlu0 %v360_v1  ;;  %v191_v2 = vmul.f32 %v360_v1, %v360_v1  ;;  %v192_v4 = vmul.f32 %v361_v3, %v361_v3  ;;  %s508_s22 = sshra.s32 %s257_s19, 4  ;;  %s514_s27 = scalar_lea.hbm %s734_s2, 16  ;;  %s509_s22 = int_to_ptr.hbm [resolvable:$true] %s508_s22 }
  0x33   : > { %s510_s24 = scalar_lea.hbm %s509_s22, 8  ;;  %p515_p11 = scmp.lt.s32.totalorder %s509_s22, %s734_s2 }
  0x34   : > { %193 = vadd.xlane.f32.xlu1 %v191_v2  ;;  %p511_p1 = scmp.ne.s32.totalorder %s509_s22, %s510_s24  ;;  %p516_p9 = scmp.lt.s32.totalorder %s514_s27, %s510_s24 }
  0x36   : > { %p512_p4 = pnand %p511_p1, %p655_p7  ;;  %p517_p2 = por %p516_p9, %p515_p11 }
  0x38   : > { %p513_p8 = pneg %p512_p4 }
  0x3a   : > { %189 = vadd.xlane.f32.xlu0 %v361_v3  ;;  %p518_p10 = pnand %p517_p2, %p513_p8 }
  0x3c   : > { %195 = vadd.xlane.f32.xlu1 %v192_v4 }
  0xa5   : > { %v188_v5 = vpop.xlane.xlu0 %187 }
  0xa6   : > { %v197_v6 = vmul.f32 0.0078125, %v188_v5 }
  0xa7   : > { %v194_v7 = vpop.xlane.xlu1 %193 }
  0xa8   : > { %v201_v8 = vmul.f32 %v197_v6, %v197_v6  ;;  %v199_v9 = vmul.f32 0.0078125, %v194_v7  ;;  %v229_v33 = vsub.f32 %v360_v1, %v197_v6 }
  0xaa   : > { %v203_v10 = vsub.f32 %v199_v9, %v201_v8 }
  0xac   : > { %v205_v11 = vmax.f32 %v203_v10, 0.0 }
  0xad   : > { %v190_v12 = vpop.xlane.xlu0 %189 }
  0xae   : > { %v207_v13 = vadd.f32 1e-05, %v205_v11  ;;  %v198_v14 = vmul.f32 0.0078125, %v190_v12 }
  0xaf   : > { %v196_v15 = vpop.xlane.xlu1 %195 }
  0xb0   : > { %430 = vrsqrt.f32 %v207_v13  ;;  %v202_v16 = vmul.f32 %v198_v14, %v198_v14  ;;  %v200_v17 = vmul.f32 0.0078125, %v196_v15  ;;  %vm215_vm1 = vweird.f32 %v207_v13 }
  0xb1   : > { %v230_v36 = vsub.f32 %v361_v3, %v198_v14 }
  0xb2   : > { %v204_v18 = vsub.f32 %v200_v17, %v202_v16 }
  0xb4   : > { %v206_v19 = vmax.f32 %v204_v18, 0.0 }
  0xb6   : > { %v431_v20 = vpop.eup %430  ;;  %v208_v22 = vadd.f32 1e-05, %v206_v19 }
  0xb7   : > { %v210_v21 = vmul.f32 %v431_v20, %v207_v13  ;;  %vm216_vm0 = vweird.f32 %v431_v20 }
  0xb8   : > { %432 = vrsqrt.f32 %v208_v22  ;;  %vm217_vm2 = vmor %vm215_vm1, %vm216_vm0  ;;  %vm225_vm4 = vweird.f32 %v208_v22 }
  0xb9   : > { %v211_v23 = vmul.f32 %v431_v20, %v210_v21 }
  0xbb   : > { %v212_v24 = vmul.f32 0.5, %v211_v23 }
  0xbd   : > { %v213_v25 = vsub.f32 1.5, %v212_v24 }
  0xbe   : > { %v433_v26 = vpop.eup %432 }
  0xbf   : > { %v220_v27 = vmul.f32 %v433_v26, %v208_v22  ;;  %v214_v28 = vmul.f32 %v431_v20, %v213_v25  ;;  %vm226_vm3 = vweird.f32 %v433_v26 }
  0xc0   : > { %vm227_vm5 = vmor %vm225_vm4, %vm226_vm3 }
  0xc1   : > { %v221_v29 = vmul.f32 %v433_v26, %v220_v27  ;;  %v218_v31 = vsel %vm217_vm2, %v431_v20, %v214_v28 }
  0xc2   : > { %v231_v35 = vmul.f32 %v229_v33, %v218_v31 }
  0xc3   : > { %v222_v30 = vmul.f32 0.5, %v221_v29 }
  0xc4   : > { %v235_v41 = vmul.f32 %v233_v37, %v231_v35 }
  0xc5   : > { %v223_v32 = vsub.f32 1.5, %v222_v30 }
  0xc7   : > { %v224_v34 = vmul.f32 %v433_v26, %v223_v32 }
  0xc9   : > { %v228_v39 = vsel %vm227_vm5, %v433_v26, %v224_v34 }
  0xca   : > { %v232_v40 = vmul.f32 %v230_v36, %v228_v39 }
  0xcc   : > { %v236_v42 = vmul.f32 %v234_v38, %v232_v40 }
  0xce   : > { %v365_v43 = vpack.c.bf16 %v236_v42, %v235_v41 }
  0xd0   : > { %366 = vst [vmem:[%s180_s13] sm:$0xff] %v365_v43  }
  0xd1   : > { %521 = shalt.err (!%p518_p10)
}
  0xd2   : > { %s571_s4 = smov 64   ;;  %s572_s5 = smov 4  }
  0xd3   : > { %373 = dma.vmem_to_hbm [thread:$0]  (%p655_p7), %s255_s18, 128, %s257_s19, %s242_s21, %s571_s4, %s571_s4, %s572_s5  }
  0xd4 PF: > { %s271_s6 = sand.u32 1, %s552_s9   ;;  %p740_p12 = scmp.ge.s32.totalorder %s564_s12, 2 }
  0xd5   : > { %s272_s7 = scalar_lea.sflag [#allocation4], %s271_s6 }
  0xd6   : > { %p384_p13 = pnand %p740_p12, %p623_p6 }
  0xd8   : > { %p385_p0 = pneg %p384_p13 }
  0xda   : > { %547 = dma.done.wait (%p385_p0), %s272_s7, 128  }
  0xdb   : > { %549 = vsyncadd (%p385_p0), %s272_s7, 4294967168  ;;  %p16_p3 = scmp.ge.s32.totalorder %s641_s23, 4   ;;  %s741_s9 = smov %s556_s10 }
  0xdc   : > { %s742_s10 = smov %s560_s11  ;;  %s743_s11 = smov %s651_s28 }
  0xdd   : > { %s744_s12 = smov %s641_s23  ;;  %18 = sbr.rel (!%p16_p3) target bundleno = 6 (0x6), region = 77 }
  0xe2   :  { %278 = vsyncpa [#allocation3], 1 }
  0xe3   :  { %280 = vsyncpa [#allocation3 + $0x1], 1 }
  0xe4   :  { %281 = vsyncpa [#allocation6], 1 }
  0xe5   :  { %282 = vsyncpa [#allocation4], 1 }
  0xe6   :  { %284 = vsyncpa [#allocation4 + $0x1], 1 }

</bundles_post_ra>
